<compile_context>
chip_gen: v7x
topology: tpu7x:2x2x1
jax: 0.10.0
libtpu: 0.0.40
codegen_flags: <defaults>
</compile_context>

<pallas_src>
import functools

import jax
import jax.numpy as jnp
from jax import lax
from jax.experimental import pallas as pl
from jax.experimental.pallas import tpu as pltpu

_LANE = 128
_OUT_DIM = 7
_TARGET_BLOCK_BYTES = 8 * 1024 * 1024   # ~8 MiB input blocks (16 MiB double-buffered)
_MAX_LANE_GROUPS = 128                   # cap unroll: tile_hw <= 128*128 = 16384
_FOLD_CHUNK = 8                          # lane groups folded in registers per acc update


def _round_up(x, m):
    return ((x + m - 1) // m) * m


def _row_partial_kernel(x_ref, o_ref, acc_ref, *, hw_total, ragged_hw):
    """Accumulate lane-wise partial row sums of the current HW slice.

    x_ref  : [tile_n, tile_hw]   input tile (channel squeezed, spatial flat)
    o_ref  : [1, tile_n, 128]    lane-wise partial-sum slab for (split, n-tile)
    acc_ref: [tile_n, 128] f32   running lane-wise accumulator (VMEM scratch)
    """
    s = pl.program_id(1)                 # HW split (parallel, megacore)
    j = pl.program_id(2)                 # HW step within this split (reduction)
    n_hw_steps = pl.num_programs(2)
    tile_n, tile_hw = x_ref.shape
    n_groups = tile_hw // _LANE

    @pl.when(j == 0)
    def _init():
        acc_ref[...] = jnp.zeros_like(acc_ref)

    def accumulate(masked):
        if masked:
            # Global column offset of this tile (only needed for tail masking).
            hw_base = (s * n_hw_steps + j) * tile_hw
        for g0 in range(0, n_groups, _FOLD_CHUNK):
            part = None
            for g in range(g0, min(g0 + _FOLD_CHUNK, n_groups)):
                sl = x_ref[:, g * _LANE:(g + 1) * _LANE]
                if masked:
                    col = hw_base + g * _LANE + lax.broadcasted_iota(
                        jnp.int32, (tile_n, _LANE), 1)
                    sl = jnp.where(col < hw_total, sl, 0.0)
                part = sl if part is None else part + sl
            acc_ref[...] += part

    if ragged_hw:
        # Only the globally-last HW tile has out-of-bounds columns.
        is_last_global = jnp.logical_and(s == pl.num_programs(1) - 1,
                                         j == n_hw_steps - 1)

        @pl.when(jnp.logical_not(is_last_global))
        def _body():
            accumulate(False)

        @pl.when(is_last_global)
        def _tail():
            accumulate(True)
    else:
        accumulate(False)

    @pl.when(j == n_hw_steps - 1)
    def _finalize():
        o_ref[0] = acc_ref[...]


def _pick_tile_n(n):
    if n <= 256:
        return n            # full-dim block: legal for any n, zero padding waste
    for t in (256, 128, 64, 32, 16, 8):
        if (_round_up(n, t) - n) / n <= 0.07:   # bound wasted HBM traffic to ~7%
            return t
    return 8


@jax.jit
def modified_model_forward(x_nchw, conv_w, conv_b, head_w, head_b):
    """x_nchw: [N, 1, H, W] float32. Returns [N, 7] float32."""
    N, C, H, W = x_nchw.shape
    assert C == 1, "upchanneler expects a single input channel"
    HW = H * W

    # Algebraic fold (conv1x1, mean pool and linear head are all linear):
    #   y[n, :] = mean(x[n]) * (w1^T @ w2) + (b1^T @ w2 + b2)
    w1 = conv_w.reshape(3).astype(jnp.float32)             # [3]
    b1 = conv_b.reshape(3).astype(jnp.float32)              # [3]
    w2 = head_w.T.astype(jnp.float32)                       # [3, 7]
    alpha = w1 @ w2                                          # [7]
    beta = b1 @ w2 + head_b.astype(jnp.float32)              # [7]

    x_flat = x_nchw.reshape(N, HW).astype(jnp.float32)       # no pad, no copy

    # ---- tiling ----
    tile_n = _pick_tile_n(N)
    hw_pad = _round_up(HW, _LANE)
    tile_hw = min(hw_pad,
                  _MAX_LANE_GROUPS * _LANE,
                  max(_LANE, (_TARGET_BLOCK_BYTES // (tile_n * 4)) // _LANE * _LANE))
    n_tiles_n = pl.cdiv(N, tile_n)
    hw_tiles_total = pl.cdiv(HW, tile_hw)
    ragged_hw = (HW % tile_hw) != 0

    # Megacore: if there is only one N tile, split HW into two parallel halves
    # so both v7x TensorCores get work (harmless on single-core chips).
    n_split = 2 if (n_tiles_n == 1 and hw_tiles_total >= 2
                    and hw_tiles_total % 2 == 0) else 1
    hw_per_split = hw_tiles_total // n_split

    kernel = functools.partial(_row_partial_kernel,
                               hw_total=HW, ragged_hw=ragged_hw)

    lane_partial = pl.pallas_call(
        kernel,
        out_shape=jax.ShapeDtypeStruct((n_split, N, _LANE), jnp.float32),
        grid_spec=pltpu.PrefetchScalarGridSpec(
            num_scalar_prefetch=0,
            grid=(n_tiles_n, n_split, hw_per_split),
            in_specs=[
                pl.BlockSpec((tile_n, tile_hw),
                             lambda i, s, j: (i, s * hw_per_split + j)),
            ],
            out_specs=pl.BlockSpec((1, tile_n, _LANE), lambda i, s, j: (s, i, 0)),
            scratch_shapes=[pltpu.VMEM((tile_n, _LANE), jnp.float32)],
        ),
        compiler_params=pltpu.CompilerParams(
            dimension_semantics=("parallel", "parallel", "arbitrary"),
            vmem_limit_bytes=32 * 1024 * 1024),
        cost_estimate=pl.CostEstimate(
            flops=int(N) * int(HW),
            transcendentals=0,
            bytes_accessed=int(N) * int(HW) * 4 + n_split * int(N) * _LANE * 4),
    )(x_flat)

    # Tiny epilogue, fused by XLA inside the same jit.
    row_sum = jnp.sum(lane_partial, axis=(0, 2))                       # [N]
    return row_sum[:, None] * (alpha / HW)[None, :] + beta[None, :]    # [N, 7]


def _reference_forward(x_nchw, conv_w, conv_b, head_w, head_b):
    """Pure-JAX reference replicating the PyTorch forward structure."""
    # Conv2d(1, 3, kernel_size=1):
    up = (x_nchw[:, 0:1, :, :] * conv_w.reshape(1, 3, 1, 1)
          + conv_b.reshape(1, 3, 1, 1))                    # [N, 3, H, W]
    pooled = up.mean(axis=(2, 3))                          # [N, 3]
    return pooled @ head_w.T + head_b                      # [N, 7]


if __name__ == "__main__":
    key = jax.random.PRNGKey(0)
    k_x, k_w1, k_b1, k_w2, k_b2 = jax.random.split(key, 5)

    # Small shapes consistent with the module: NCHW, single input channel.
    N, C, H, W = 2, 1, 16, 16
    x = jax.random.normal(k_x, (N, C, H, W), dtype=jnp.float32)

    conv_w = jax.random.normal(k_w1, (3, 1, 1, 1), dtype=jnp.float32) * 0.1
    conv_b = jax.random.normal(k_b1, (3,), dtype=jnp.float32) * 0.1
    # TODO(synk): `original_model` is an external pretrained backbone in the
    # PyTorch code; a synthetic avgpool + Linear(3->7) head stands in for it.
    head_w = jax.random.normal(k_w2, (7, 3), dtype=jnp.float32) * 0.1
    head_b = jax.random.normal(k_b2, (7,), dtype=jnp.float32) * 0.1

    out = modified_model_forward(x, conv_w, conv_b, head_w, head_b)
    out = jax.block_until_ready(out)

    ref = _reference_forward(x, conv_w, conv_b, head_w, head_b)
    assert out.shape == (N, 7)
    assert jnp.allclose(out, ref, atol=1e-5, rtol=1e-4), "mismatch vs reference"

    print("KERNEL_OK")
</pallas_src>

<mosaic_0001>
module attributes {stable_mosaic.version = 11 : i64} {
  func.func @_row_partial_kernel(%arg0: i32, %arg1: i32, %arg2: i32, %arg3: memref<2x256xf32, #tpu.memory_space<vmem>>, %arg4: memref<1x2x128xf32, #tpu.memory_space<vmem>>, %arg5: memref<2x128xf32, #tpu.memory_space<vmem>>) attributes {dimension_semantics = [#tpu.dimension_semantics<parallel>, #tpu.dimension_semantics<parallel>, #tpu.dimension_semantics<arbitrary>], iteration_bounds = array<i64: 1, 1, 1>, scalar_prefetch = 0 : i64, scratch_operands = 1 : i64, tpu.core_type = #tpu.core_type<tc>, window_params = [{transform_indices = @transform_0, window_bounds = array<i64: 2, 256>}, {transform_indices = @transform_1, window_bounds = array<i64: 1, 2, 128>}]} {
    %c0_i32 = arith.constant 0 : i32
    %0 = arith.cmpi eq, %arg2, %c0_i32 : i32
    %1 = arith.extui %0 : i1 to i32
    %c0_i32_0 = arith.constant 0 : i32
    %2 = arith.cmpi ne, %1, %c0_i32_0 : i32
    scf.if %2 {
      %cst = arith.constant 0.000000e+00 : f32
      %12 = vector.broadcast %cst : f32 to vector<2x128xf32>
      %c0_9 = arith.constant 0 : index
      %c0_10 = arith.constant 0 : index
      %13 = vector.load %arg5[%c0_9, %c0_10] : memref<2x128xf32, #tpu.memory_space<vmem>>, vector<2x128xf32>
      tpu.vector_store %arg5[%c0_9, %c0_10], %12 {strides = array<i32>} : memref<2x128xf32, #tpu.memory_space<vmem>>, vector<2x128xf32>,
    } else {
    }
    %c0 = arith.constant 0 : index
    %c0_1 = arith.constant 0 : index
    %3 = vector.load %arg3[%c0, %c0_1] : memref<2x256xf32, #tpu.memory_space<vmem>>, vector<2x128xf32>
    %c0_2 = arith.constant 0 : index
    %c128 = arith.constant 128 : index
    %4 = vector.load %arg3[%c0_2, %c128] : memref<2x256xf32, #tpu.memory_space<vmem>>, vector<2x128xf32>
    %5 = arith.addf %3, %4 : vector<2x128xf32>
    %c0_3 = arith.constant 0 : index
    %c0_4 = arith.constant 0 : index
    %6 = vector.load %arg5[%c0_3, %c0_4] : memref<2x128xf32, #tpu.memory_space<vmem>>, vector<2x128xf32>
    %7 = arith.addf %6, %5 : vector<2x128xf32>
    %c0_5 = arith.constant 0 : index
    %c0_6 = arith.constant 0 : index
    %8 = vector.load %arg5[%c0_5, %c0_6] : memref<2x128xf32, #tpu.memory_space<vmem>>, vector<2x128xf32>
    tpu.vector_store %arg5[%c0_5, %c0_6], %7 {strides = array<i32>} : memref<2x128xf32, #tpu.memory_space<vmem>>, vector<2x128xf32>,
    %c0_i32_7 = arith.constant 0 : i32
    %9 = arith.cmpi eq, %arg2, %c0_i32_7 : i32
    %10 = arith.extui %9 : i1 to i32
    %c0_i32_8 = arith.constant 0 : i32
    %11 = arith.cmpi ne, %10, %c0_i32_8 : i32
    scf.if %11 {
      %c0_9 = arith.constant 0 : index
      %c0_10 = arith.constant 0 : index
      %12 = vector.load %arg5[%c0_9, %c0_10] : memref<2x128xf32, #tpu.memory_space<vmem>>, vector<2x128xf32>
      %c0_11 = arith.constant 0 : index
      %c0_12 = arith.constant 0 : index
      %c0_13 = arith.constant 0 : index
      %13 = vector.load %arg4[%c0_11, %c0_12, %c0_13] : memref<1x2x128xf32, #tpu.memory_space<vmem>>, vector<1x2x128xf32>
      %14 = vector.shape_cast %13 : vector<1x2x128xf32> to vector<2x128xf32>
      %15 = vector.shape_cast %12 : vector<2x128xf32> to vector<1x2x128xf32>
      tpu.vector_store %arg4[%c0_11, %c0_12, %c0_13], %15 {strides = array<i32>} : memref<1x2x128xf32, #tpu.memory_space<vmem>>, vector<1x2x128xf32>,
    } else {
    }
    return
  }
  func.func @transform_0(%arg0: i32, %arg1: i32, %arg2: i32) -> (i32, i32) {
    %c1_i32 = arith.constant 1 : i32
    %0 = arith.muli %arg1, %c1_i32 : i32
    %1 = arith.addi %0, %arg2 : i32
    %c0_i32 = arith.constant 0 : i32
    return %arg0, %1 : i32, i32
  }
  func.func @transform_1(%arg0: i32, %arg1: i32, %arg2: i32) -> (i32, i32, i32) {
    %c0_i32 = arith.constant 0 : i32
    %c0_i32_0 = arith.constant 0 : i32
    return %arg1, %arg0, %c0_i32 : i32, i32, i32
  }
}

</mosaic_0001>

<bundles_post_ra>
// kernel: modified_model_forward.1
= control target key start
LH: loop header
LB: loop body
LE: loop exit
PB: predicated region body
PF: predicated region fallthrough
CT: control target
= control target key end

     0   :  { %v57_v0 = vmov 0.0   ;;  %s77_s0 = inlined_call_operand.vmem [shape: f32[2,256], index: 0, kind: input, shape index: {}]   ;;  %s78_s1 = inlined_call_operand.vmem [shape: f32[1,2,128], index: 1, kind: output, shape index: {}]  }
   0x1   :  { %34 = vst [vmem:[#allocation2] sm:$0x3] %v57_v0  ;;  %v35_v1 = vld [vmem:[%s77_s0] sm:$0x3]  ;;  %v36_v2 = vld [vmem:[%s77_s0 + $0x2] sm:$0x3] }
   0x2   :  { %v37_v3 = vadd.f32 %v36_v2, %v35_v1 }
   0x8   :  { %v38_v4 = vld [vmem:[#allocation2] sm:$0x3] }
   0x9   :  { %v39_v5 = vadd.f32 %v38_v4, %v37_v3 }
   0xb   :  { %40 = vst [vmem:[#allocation2] sm:$0x3] %v39_v5 }
  0x12   :  { %v44_v6 = vld [vmem:[#allocation2] sm:$0x3] }
  0x13   :  { %45 = vst [vmem:[%s78_s1] sm:$0x3] %v44_v6 }

</bundles_post_ra>
